<compile_context>
chip_gen: v6e
topology: v6e:2x2x1
jax: 0.10.0
libtpu: 0.0.40
codegen_flags: <defaults>
</compile_context>

<pallas_src>
import functools

import jax
import jax.numpy as jnp
from jax.experimental import pallas as pl
from jax.experimental.pallas import tpu as pltpu

LANES = 128
SUBLANES = 8
CHUNK_ROWS = 512            # rows per inner reduction strip (<= 256 KiB f32)


def _tpu_tuning():
    """(num_slices, max_block_rows) chosen per TPU generation (safe default)."""
    kind = ""
    try:
        kind = (getattr(jax.devices()[0], "device_kind", "") or "").lower()
    except Exception:
        pass
    if "v7" in kind:                                   # dual TensorCore
        return 2, 8192
    if "v6" in kind:
        return 1, 8192
    if "v5e" in kind or "v5 lite" in kind or "v5litepod" in kind:
        return 1, 4096
    if "v5" in kind:                                   # v5p
        return 1, 8192
    return 1, 2048                                     # unknown / older chips


def _wmse_kernel(wb_ref, x_ref, t_ref, m_ref, out_ref, acc_ref, *,
                 block_rows, chunk_rows, n_valid_rows, steps_per_slice,
                 n_row_blocks, has_partial_tail, unroll):
    c = pl.program_id(0)          # slice (core) index
    i = pl.program_id(1)          # step within the slice

    @pl.when(i == 0)
    def _init():
        acc_ref[...] = jnp.zeros_like(acc_ref)

    rb = c * steps_per_slice + i              # unclamped logical row-block idx
    wb = wb_ref[0]
    wbm1 = wb - 1.0
    n_chunks = block_rows // chunk_rows

    def _accum_chunk(r0, apply_row_mask):
        x = x_ref[pl.ds(r0, chunk_rows), :].astype(jnp.float32)
        t = t_ref[pl.ds(r0, chunk_rows), :].astype(jnp.float32)
        m = m_ref[pl.ds(r0, chunk_rows), :].astype(jnp.float32)
        d = x - t
        se = d * d
        # weights * se, with weights = 1 + (weight_bone - 1) * mask
        wse = se + wbm1 * (m * se)
        if apply_row_mask:
            # Only the partial tail block pays iota + cmp + select; garbage
            # (possibly NaN/Inf) rows are zeroed BEFORE accumulation.
            row = jax.lax.broadcasted_iota(jnp.int32, (chunk_rows, LANES), 0)
            valid = (rb * block_rows + r0 + row) < n_valid_rows
            wse = jnp.where(valid, wse, 0.0)
        # Per-lane/sublane partial sums: pure VPU vreg adds, no XLU.
        acc_ref[...] += wse.reshape(chunk_rows // SUBLANES, SUBLANES,
                                    LANES).sum(axis=0)

    def _accum_block(apply_row_mask):
        if n_chunks == 1:
            _accum_chunk(0, apply_row_mask)
        else:
            def body(j, carry):
                r0 = pl.multiple_of(j * chunk_rows, chunk_rows)
                _accum_chunk(r0, apply_row_mask)
                return carry
            jax.lax.fori_loop(0, n_chunks, body, jnp.int32(0), unroll=unroll)

    full_blocks = n_row_blocks - 1 if has_partial_tail else n_row_blocks

    # Fast path: fully in-range blocks, no masking at all.
    @pl.when(rb < full_blocks)
    def _fast():
        _accum_block(apply_row_mask=False)

    # Masked path: the single partial tail block (if any).
    if has_partial_tail:
        @pl.when(rb == n_row_blocks - 1)
        def _tail():
            _accum_block(apply_row_mask=True)

    # Clamped overflow steps (rb >= n_row_blocks, only possible with the
    # 2-slice split) match neither branch -> compute/accumulate skipped.

    @pl.when(i == pl.num_programs(1) - 1)
    def _emit():
        out_ref[0] = acc_ref[...]


def weighted_mse_loss(inputs, targets, mask, weight_bone):
    """Pallas TPU implementation of WeightedMSELoss.forward."""
    assert inputs.shape == targets.shape == mask.shape
    n_elems = int(inputs.size)
    tile = SUBLANES * LANES   # 1024

    def _flat2d(a):
        a = jnp.ravel(a)      # free for contiguous arrays; keep native dtype
        pad = (-n_elems) % tile
        if pad:
            # Rare ragged case only: one zero-pad copy.  Padding contributes
            # exactly 0 to the weighted sum (inputs == targets == 0 there).
            a = jnp.pad(a, (0, pad))
        return a.reshape(-1, LANES)

    x2d = _flat2d(inputs)
    t2d = _flat2d(targets)
    m2d = _flat2d(mask)

    n_rows = x2d.shape[0]                      # multiple of 8 by construction

    num_slices_hw, max_block_rows = _tpu_tuning()

    # Block rows: whole array if small, else the largest multiple of
    # CHUNK_ROWS <= min(max_block_rows, n_rows).  Guarantees the inner strip
    # loop tiles the block exactly; any remainder becomes one masked tail
    # block.
    if n_rows <= CHUNK_ROWS:
        block_rows = n_rows
    else:
        block_rows = min(max_block_rows, (n_rows // CHUNK_ROWS) * CHUNK_ROWS)
    chunk_rows = min(CHUNK_ROWS, block_rows)
    n_chunks = block_rows // chunk_rows

    n_row_blocks = pl.cdiv(n_rows, block_rows)
    num_slices = num_slices_hw if n_row_blocks >= 2 else 1
    steps_per_slice = pl.cdiv(n_row_blocks, num_slices)
    has_partial_tail = (n_rows % block_rows) != 0

    if num_slices * steps_per_slice == n_row_blocks:
        # Grid covers the blocks exactly: trivial index math, no clamp.
        def _in_map(c, i):
            return (c * steps_per_slice + i, 0)
    else:
        def _in_map(c, i):
            # Clamp keeps the (discarded) overflow-step DMA in bounds.
            return (jnp.minimum(c * steps_per_slice + i, n_row_blocks - 1), 0)

    kernel = functools.partial(
        _wmse_kernel,
        block_rows=block_rows,
        chunk_rows=chunk_rows,
        n_valid_rows=n_rows,
        steps_per_slice=steps_per_slice,
        n_row_blocks=n_row_blocks,
        has_partial_tail=has_partial_tail,
        unroll=(n_chunks <= 32),
    )

    wb_arr = jnp.asarray(weight_bone, dtype=jnp.float32).reshape((1,))

    in_bytes_per_row = LANES * (x2d.dtype.itemsize + t2d.dtype.itemsize
                                + m2d.dtype.itemsize)
    block_in_bytes = block_rows * in_bytes_per_row
    # 2 pipeline buffers per input + headroom for scratch/intermediates.
    vmem_bytes = int(max(2 * block_in_bytes + (4 << 20), 12 << 20))

    cost = pl.CostEstimate(
        flops=6 * n_elems,
        transcendentals=0,
        bytes_accessed=int(n_rows * in_bytes_per_row
                           + num_slices * SUBLANES * LANES * 4),
    )

    partials = pl.pallas_call(
        kernel,
        out_shape=jax.ShapeDtypeStruct((num_slices, SUBLANES, LANES),
                                       jnp.float32),
        grid_spec=pltpu.PrefetchScalarGridSpec(
            num_scalar_prefetch=0,
            grid=(num_slices, steps_per_slice),
            in_specs=[
                pl.BlockSpec(memory_space=pltpu.MemorySpace.SMEM),   # weight_bone
                pl.BlockSpec((block_rows, LANES), _in_map),
                pl.BlockSpec((block_rows, LANES), _in_map),
                pl.BlockSpec((block_rows, LANES), _in_map),
            ],
            out_specs=pl.BlockSpec((1, SUBLANES, LANES),
                                   lambda c, i: (c, 0, 0)),
            scratch_shapes=[pltpu.VMEM((SUBLANES, LANES), jnp.float32)],
        ),
        compiler_params=pltpu.CompilerParams(
            dimension_semantics=("parallel", "arbitrary"),
            vmem_limit_bytes=vmem_bytes,
        ),
        cost_estimate=cost,
    )(wb_arr, x2d, t2d, m2d)

    # mean = (sum of per-slice per-lane partial sums) / true element count.
    return (jnp.sum(partials) / jnp.float32(n_elems)).astype(jnp.float32)


def _reference(inputs, targets, mask, weight_bone):
    weights = jnp.ones_like(targets) * (1.0 - mask) + weight_bone * mask
    return jnp.mean(weights * (inputs - targets) ** 2)


if __name__ == "__main__":
    key = jax.random.PRNGKey(0)
    k1, k2, k3 = jax.random.split(key, 3)

    N, C, H, W = 2, 4, 16, 16  # NCHW, like the PyTorch inputs
    weight_bone = 5.0

    inputs = jax.random.normal(k1, (N, C, H, W), dtype=jnp.float32)
    targets = jax.random.normal(k2, (N, C, H, W), dtype=jnp.float32)
    mask = (jax.random.uniform(k3, (N, C, H, W)) > 0.5).astype(jnp.float32)

    loss = weighted_mse_loss(inputs, targets, mask, weight_bone)
    loss = jax.block_until_ready(loss)
    ref = _reference(inputs, targets, mask, weight_bone)
    assert jnp.allclose(loss, ref, rtol=1e-5, atol=1e-5), (loss, ref)

    # Ragged element count (not a multiple of 1024): exercises the zero-pad
    # path; result must still divide by the true element count.
    k4, k5, k6 = jax.random.split(jax.random.PRNGKey(1), 3)
    shp = (3, 5, 7, 11)
    x2 = jax.random.normal(k4, shp, dtype=jnp.float32)
    t2 = jax.random.normal(k5, shp, dtype=jnp.float32)
    m2 = (jax.random.uniform(k6, shp) > 0.7).astype(jnp.float32)
    loss2 = jax.block_until_ready(weighted_mse_loss(x2, t2, m2, weight_bone))
    ref2 = _reference(x2, t2, m2, weight_bone)
    assert jnp.allclose(loss2, ref2, rtol=1e-5, atol=1e-5), (loss2, ref2)

    print("KERNEL_OK")
</pallas_src>

<mosaic_0001>
module attributes {stable_mosaic.version = 11 : i64} {
  func.func @_wmse_kernel(%arg0: i32, %arg1: i32, %arg2: memref<1xf32, #tpu.memory_space<smem>>, %arg3: memref<16x128xf32, #tpu.memory_space<vmem>>, %arg4: memref<16x128xf32, #tpu.memory_space<vmem>>, %arg5: memref<16x128xf32, #tpu.memory_space<vmem>>, %arg6: memref<1x8x128xf32, #tpu.memory_space<vmem>>, %arg7: memref<8x128xf32, #tpu.memory_space<vmem>>) attributes {dimension_semantics = [#tpu.dimension_semantics<parallel>, #tpu.dimension_semantics<arbitrary>], iteration_bounds = array<i64: 1, 1>, scalar_prefetch = 0 : i64, scratch_operands = 1 : i64, tpu.core_type = #tpu.core_type<tc>, window_params = [{transform_indices = @transform_0, window_bounds = array<i64: 1>}, {transform_indices = @transform_1, window_bounds = array<i64: 16, 128>}, {transform_indices = @transform_2, window_bounds = array<i64: 16, 128>}, {transform_indices = @transform_3, window_bounds = array<i64: 16, 128>}, {transform_indices = @transform_4, window_bounds = array<i64: 1, 8, 128>}]} {
    %c0_i32 = arith.constant 0 : i32
    %0 = arith.cmpi eq, %arg1, %c0_i32 : i32
    %1 = arith.extui %0 : i1 to i32
    %c0_i32_0 = arith.constant 0 : i32
    %2 = arith.cmpi ne, %1, %c0_i32_0 : i32
    scf.if %2 {
      %cst_5 = arith.constant 0.000000e+00 : f32
      %13 = vector.broadcast %cst_5 : f32 to vector<8x128xf32>
      %c0_6 = arith.constant 0 : index
      %c0_7 = arith.constant 0 : index
      %14 = vector.load %arg7[%c0_6, %c0_7] : memref<8x128xf32, #tpu.memory_space<vmem>>, vector<8x128xf32>
      tpu.vector_store %arg7[%c0_6, %c0_7], %13 {strides = array<i32>} : memref<8x128xf32, #tpu.memory_space<vmem>>, vector<8x128xf32>,
    } else {
    }
    %c1_i32 = arith.constant 1 : i32
    %3 = arith.muli %arg0, %c1_i32 : i32
    %4 = arith.addi %3, %arg1 : i32
    %c0 = arith.constant 0 : index
    %5 = memref.load %arg2[%c0] : memref<1xf32, #tpu.memory_space<smem>>
    %cst = arith.constant 1.000000e+00 : f32
    %6 = arith.subf %5, %cst : f32
    %c1_i32_1 = arith.constant 1 : i32
    %7 = arith.cmpi slt, %4, %c1_i32_1 : i32
    %8 = arith.extui %7 : i1 to i32
    %c0_i32_2 = arith.constant 0 : i32
    %9 = arith.cmpi ne, %8, %c0_i32_2 : i32
    scf.if %9 {
      %c0_5 = arith.constant 0 : index
      %c0_6 = arith.constant 0 : index
      %13 = vector.load %arg3[%c0_5, %c0_6] : memref<16x128xf32, #tpu.memory_space<vmem>>, vector<16x128xf32>
      %c0_7 = arith.constant 0 : index
      %c0_8 = arith.constant 0 : index
      %14 = vector.load %arg4[%c0_7, %c0_8] : memref<16x128xf32, #tpu.memory_space<vmem>>, vector<16x128xf32>
      %c0_9 = arith.constant 0 : index
      %c0_10 = arith.constant 0 : index
      %15 = vector.load %arg5[%c0_9, %c0_10] : memref<16x128xf32, #tpu.memory_space<vmem>>, vector<16x128xf32>
      %16 = arith.subf %13, %14 : vector<16x128xf32>
      %17 = arith.mulf %16, %16 : vector<16x128xf32>
      %18 = arith.mulf %15, %17 : vector<16x128xf32>
      %19 = vector.broadcast %6 : f32 to vector<16x128xf32>
      %20 = arith.mulf %19, %18 : vector<16x128xf32>
      %21 = arith.addf %17, %20 : vector<16x128xf32>
      %c0_11 = arith.constant 0 : index
      %c0_12 = arith.constant 0 : index
      %22 = vector.load %arg7[%c0_11, %c0_12] : memref<8x128xf32, #tpu.memory_space<vmem>>, vector<8x128xf32>
      %23 = vector.shape_cast %21 : vector<16x128xf32> to vector<2x8x128xf32>
      %cst_13 = arith.constant dense<0.000000e+00> : vector<8x128xf32>
      %24 = vector.multi_reduction <add>, %23, %cst_13 [0] : vector<2x8x128xf32> to vector<8x128xf32>
      %25 = arith.addf %22, %24 : vector<8x128xf32>
      %c0_14 = arith.constant 0 : index
      %c0_15 = arith.constant 0 : index
      %26 = vector.load %arg7[%c0_14, %c0_15] : memref<8x128xf32, #tpu.memory_space<vmem>>, vector<8x128xf32>
      tpu.vector_store %arg7[%c0_14, %c0_15], %25 {strides = array<i32>} : memref<8x128xf32, #tpu.memory_space<vmem>>, vector<8x128xf32>,
    } else {
    }
    %c0_i32_3 = arith.constant 0 : i32
    %10 = arith.cmpi eq, %arg1, %c0_i32_3 : i32
    %11 = arith.extui %10 : i1 to i32
    %c0_i32_4 = arith.constant 0 : i32
    %12 = arith.cmpi ne, %11, %c0_i32_4 : i32
    scf.if %12 {
      %c0_5 = arith.constant 0 : index
      %c0_6 = arith.constant 0 : index
      %13 = vector.load %arg7[%c0_5, %c0_6] : memref<8x128xf32, #tpu.memory_space<vmem>>, vector<8x128xf32>
      %c0_7 = arith.constant 0 : index
      %c0_8 = arith.constant 0 : index
      %c0_9 = arith.constant 0 : index
      %14 = vector.load %arg6[%c0_7, %c0_8, %c0_9] : memref<1x8x128xf32, #tpu.memory_space<vmem>>, vector<1x8x128xf32>
      %15 = vector.shape_cast %14 : vector<1x8x128xf32> to vector<8x128xf32>
      %16 = vector.shape_cast %13 : vector<8x128xf32> to vector<1x8x128xf32>
      tpu.vector_store %arg6[%c0_7, %c0_8, %c0_9], %16 {strides = array<i32>} : memref<1x8x128xf32, #tpu.memory_space<vmem>>, vector<1x8x128xf32>,
    } else {
    }
    return
  }
  func.func @transform_0(%arg0: i32, %arg1: i32) -> i32 {
    %c0_i32 = arith.constant 0 : i32
    %c0_i32_0 = arith.constant 0 : i32
    return %c0_i32 : i32
  }
  func.func @transform_1(%arg0: i32, %arg1: i32) -> (i32, i32) {
    %c1_i32 = arith.constant 1 : i32
    %0 = arith.muli %arg0, %c1_i32 : i32
    %1 = arith.addi %0, %arg1 : i32
    %c0_i32 = arith.constant 0 : i32
    %c0_i32_0 = arith.constant 0 : i32
    return %1, %c0_i32 : i32, i32
  }
  func.func @transform_2(%arg0: i32, %arg1: i32) -> (i32, i32) {
    %c1_i32 = arith.constant 1 : i32
    %0 = arith.muli %arg0, %c1_i32 : i32
    %1 = arith.addi %0, %arg1 : i32
    %c0_i32 = arith.constant 0 : i32
    %c0_i32_0 = arith.constant 0 : i32
    return %1, %c0_i32 : i32, i32
  }
  func.func @transform_3(%arg0: i32, %arg1: i32) -> (i32, i32) {
    %c1_i32 = arith.constant 1 : i32
    %0 = arith.muli %arg0, %c1_i32 : i32
    %1 = arith.addi %0, %arg1 : i32
    %c0_i32 = arith.constant 0 : i32
    %c0_i32_0 = arith.constant 0 : i32
    return %1, %c0_i32 : i32, i32
  }
  func.func @transform_4(%arg0: i32, %arg1: i32) -> (i32, i32, i32) {
    %c0_i32 = arith.constant 0 : i32
    %c0_i32_0 = arith.constant 0 : i32
    %c0_i32_1 = arith.constant 0 : i32
    return %arg0, %c0_i32, %c0_i32_0 : i32, i32, i32
  }
}

</mosaic_0001>

<bundles_post_ra>
// kernel: tpu_custom_call.1
= control target key start
LH: loop header
LB: loop body
LE: loop exit
PB: predicated region body
PF: predicated region fallthrough
CT: control target
= control target key end

     0   :  { %10 = vsyncpa [#allocation5], 0  ;;  %s271_s0 = inlined_call_operand.<no memory space> [shape: f32[1], index: 0, kind: input, shape index: {}]   ;;  %s272_s1 = inlined_call_operand.hbm [shape: f32[16,128], index: 1, kind: input, shape index: {}]   ;;  %s273_s2 = inlined_call_operand.hbm [shape: f32[16,128], index: 2, kind: input, shape index: {}]   ;;  %s274_s3 = inlined_call_operand.hbm [shape: f32[16,128], index: 3, kind: input, shape index: {}]   ;;  %s275_s4 = inlined_call_operand.hbm [shape: f32[1,8,128], index: 4, kind: output, shape index: {}]  }
   0x1   :  { %11 = vsyncpa [#allocation8], 0 }
   0x2   :  { %12 = vsyncpa [#allocation6], 0  ;;  %s225_s15 = smov [#allocation7]   ;;  %s226_s17 = smov [#allocation4]  }
   0x3   :  { %s40_s16 = sshll.u32 %s225_s15, 4  ;;  %s24_s18 = sshll.u32 %s226_s17, 4  ;;  %s41_s16 = int_to_ptr.vmem [resolvable:$true] %s40_s16  ;;  %s25_s18 = int_to_ptr.vmem [resolvable:$true] %s24_s18 }
   0x4   :  { %s147_s19 = scalar_lea.vmem %s41_s16, 256  ;;  %p152_p1 = scmp.lt.s32.totalorder %s41_s16, %s41_s16 }
   0x5   :  { %p148_p0 = scmp.ne.s32.totalorder %s41_s16, %s147_s19  ;;  %p153_p2 = scmp.lt.s32.totalorder %s147_s19, %s147_s19 }
   0x7   :  { %p154_p3 = por %p153_p2, %p152_p1 }
   0x9   :  { %p155_p4 = pnand %p154_p3, %p148_p0 }
   0xb   :  { %158 = shalt.err (!%p155_p4)
}
   0xc   :  { %s227_s20 = smov 128   ;;  %s228_s21 = smov 8  }
   0xd   :  { %46 = dma.hbm_to_vmem [thread:$0]  %s273_s2, 256, %s41_s16, [#allocation8], %s227_s20, %s227_s20, %s228_s21  }
   0xe   :  { %s167_s24 = scalar_lea.vmem %s25_s18, 256  ;;  %p172_p6 = scmp.lt.s32.totalorder %s25_s18, %s25_s18 }
   0xf   :  { %p168_p5 = scmp.ne.s32.totalorder %s25_s18, %s167_s24  ;;  %p173_p7 = scmp.lt.s32.totalorder %s167_s24, %s167_s24 }
  0x11   :  { %p174_p8 = por %p173_p7, %p172_p6 }
  0x13   :  { %p175_p9 = pnand %p174_p8, %p168_p5 }
  0x15   :  { %178 = shalt.err (!%p175_p9)
}
  0x16   :  { %30 = dma.hbm_to_vmem [thread:$0]  %s272_s1, 256, %s25_s18, [#allocation5], %s227_s20, %s227_s20, %s228_s21  }
  0x17   :  { %s229_s27 = smov [#allocation9]  }
  0x18   :  { %s56_s28 = sshll.u32 %s229_s27, 4  ;;  %s57_s28 = int_to_ptr.vmem [resolvable:$true] %s56_s28 }
  0x19   :  { %s187_s29 = scalar_lea.vmem %s57_s28, 256  ;;  %p192_p11 = scmp.lt.s32.totalorder %s57_s28, %s57_s28 }
  0x1a   :  { %p188_p10 = scmp.ne.s32.totalorder %s57_s28, %s187_s29  ;;  %p193_p12 = scmp.lt.s32.totalorder %s187_s29, %s187_s29 }
  0x1c   :  { %p194_p13 = por %p193_p12, %p192_p11 }
  0x1e   :  { %p195_p0 = pnand %p194_p13, %p188_p10 }
  0x20   :  { %198 = shalt.err (!%p195_p0)
}
  0x21   :  { %62 = dma.hbm_to_vmem [thread:$0]  %s274_s3, 256, %s57_s28, [#allocation8], %s227_s20, %s227_s20, %s228_s21  }
  0x22   :  { %219 = dma.done.wait [#allocation5], 256  }
  0x23   :  { %220 = vsyncadd [#allocation5], 4294967040 }
  0x24   :  { %221 = dma.done.wait [#allocation8], 512  }
  0x25   :  { %222 = vsyncadd [#allocation8], 4294966784  ;;  %s132_s6 = sadd.f32 -1.0, %s271_s0  ;;  %v90_v0 = vld [vmem:[#allocation4] sm:$0xff]  ;;  %v91_v1 = vld [vmem:[#allocation4 + $0x8] sm:$0xff]  ;;  %s230_s3 = smov [#allocation10]  }
  0x26   :  { %v92_v2 = vld [vmem:[#allocation7] sm:$0xff]  ;;  %v93_v3 = vld [vmem:[#allocation7 + $0x8] sm:$0xff]  ;;  %v94_v5 = vld [vmem:[#allocation9] sm:$0xff]  ;;  %s122_s7 = sshll.u32 %s230_s3, 4  ;;  %s123_s7 = int_to_ptr.vmem [resolvable:$true] %s122_s7 }
  0x27   :  { %v96_v4 = vsub.f32 %v90_v0, %v92_v2  ;;  %v97_v6 = vsub.f32 %v91_v1, %v93_v3  ;;  %v95_v7 = vld [vmem:[#allocation9 + $0x8] sm:$0xff]  ;;  %v102_v10 = vstv %s132_s6  ;;  %s199_s0 = scalar_lea.vmem %s123_s7, 128  ;;  %p204_p2 = scmp.lt.s32.totalorder %s123_s7, %s123_s7 }
  0x28   :  { %p200_p1 = scmp.ne.s32.totalorder %s123_s7, %s199_s0  ;;  %p205_p3 = scmp.lt.s32.totalorder %s199_s0, %s199_s0 }
  0x29   :  { %v98_v8 = vmul.f32 %v96_v4, %v96_v4  ;;  %v99_v9 = vmul.f32 %v97_v6, %v97_v6 }
  0x2a   :  { %p206_p4 = por %p205_p3, %p204_p2 }
  0x2b   :  { %v100_v11 = vmul.f32 %v98_v8, %v94_v5  ;;  %v101_v12 = vmul.f32 %v99_v9, %v95_v7 }
  0x2c   :  { %p207_p5 = pnand %p206_p4, %p200_p1 }
  0x2d   :  { %v103_v13 = vmul.f32 %v102_v10, %v100_v11  ;;  %v104_v14 = vmul.f32 %v102_v10, %v101_v12 }
  0x2f   :  { %v105_v15 = vadd.f32 %v103_v13, %v98_v8  ;;  %v106_v16 = vadd.f32 %v104_v14, %v99_v9 }
  0x31   :  { %v108_v17 = vadd.f32 %v106_v16, %v105_v15 }
  0x33   :  { %115 = vst [vmem:[#allocation10] sm:$0xff] %v108_v17 }
  0x34   :  { %210 = shalt.err (!%p207_p5)
}
  0x35   :  { %125 = dma.vmem_to_hbm [thread:$0]  %s123_s7, 128, %s275_s4, [#allocation6]  }
  0x36   :  { %223 = dma.done.wait [#allocation6], 128  }
  0x37   :  { %224 = vsyncadd [#allocation6], 4294967168 }
  0x38   :  { %129 = vsyncpa [#allocation5], 1 }
  0x39   :  { %130 = vsyncpa [#allocation8], 1 }
  0x3a   :  { %131 = vsyncpa [#allocation6], 1 }

</bundles_post_ra>
